<compile_context>
chip_gen: v5e
topology: v5e:2x2
jax: 0.10.0
libtpu: 0.0.40
codegen_flags: <defaults>
</compile_context>

<pallas_src>
import functools

import jax
import jax.numpy as jnp
from jax.experimental import pallas as pl
from jax.experimental.pallas import tpu as pltpu

_LANE = 128
_SUBLANE = 8


def _margin_loss_kernel(pos_ref, neg_ref, out_ref, *,
                        steps_per_part, total_rows, need_mask):
    """Grid point (i, j): out_ref[0] += relu(pos_tile - neg_tile).

    The out block index depends only on the parallel axis i, so the
    (1, tile_rows, 128) output tile is resident in VMEM across the whole
    'arbitrary' j axis and acts as a per-core accumulator.
    """
    j = pl.program_id(1)

    @pl.when(j == 0)
    def _():
        out_ref[...] = jnp.zeros_like(out_ref)

    # Upcast in-register (free under the memory bound); accumulate in f32.
    diff = pos_ref[...].astype(jnp.float32) - neg_ref[...].astype(jnp.float32)
    hinge = jnp.maximum(diff, 0.0)

    if need_mask:
        # Static-only branch: zero out rows past the logical end of the input
        # (covers partial last blocks and phantom blocks of the parallel split).
        i = pl.program_id(0)
        tr, lane = pos_ref.shape
        row0 = (i * steps_per_part + j) * tr
        row_ids = row0 + jax.lax.broadcasted_iota(jnp.int32, (tr, lane), 0)
        hinge = jnp.where(row_ids < total_rows, hinge, 0.0)

    out_ref[0] += hinge


def margin_loss(pos: jax.Array, neg: jax.Array, *,
                tile_rows: int = 2048, num_parallel: int = 2) -> jax.Array:
    """sum(max(pos - neg, 0)) — semantics of marginLoss.forward."""
    assert pos.shape == neg.shape, "pos and neg must have the same shape"

    p = pos.reshape(-1)
    q = neg.reshape(-1)
    n = p.shape[0]
    if n == 0:
        return jnp.zeros((), jnp.float32)

    # Minimal padding: only when the flat length is not lane-aligned (or the
    # whole input is smaller than one (8, 128) tile).  Padded values are equal
    # zeros -> relu(0 - 0) == 0, so they never change the result.
    min_elems = _SUBLANE * _LANE
    target = max(min_elems, n + ((-n) % _LANE))
    pad = target - n
    if pad:
        p = jnp.concatenate([p, jnp.zeros((pad,), p.dtype)])
        q = jnp.concatenate([q, jnp.zeros((pad,), q.dtype)])
    rows = target // _LANE
    p2 = p.reshape(rows, _LANE)
    q2 = q.reshape(rows, _LANE)

    # Tile rows: multiple of 8, <= rows, capped at ~1 MiB (f32) per input block.
    tr = max(_SUBLANE, (min(tile_rows, rows) // _SUBLANE) * _SUBLANE)
    nblocks = pl.cdiv(rows, tr)
    npar = max(1, min(num_parallel, nblocks))     # megacore split (v7x)
    steps = pl.cdiv(nblocks, npar)
    need_mask = npar * steps * tr > rows          # static: ragged tail present?

    kernel = functools.partial(
        _margin_loss_kernel,
        steps_per_part=steps, total_rows=rows, need_mask=need_mask)

    in_bytes = rows * _LANE * (p2.dtype.itemsize + q2.dtype.itemsize)
    out_bytes = npar * tr * _LANE * 4
    cost = pl.CostEstimate(flops=2 * rows * _LANE, transcendentals=0,
                           bytes_accessed=int(in_bytes + out_bytes))

    partials = pl.pallas_call(
        kernel,
        out_shape=jax.ShapeDtypeStruct((npar, tr, _LANE), jnp.float32),
        grid=(npar, steps),
        in_specs=[
            pl.BlockSpec((tr, _LANE), lambda i, j: (i * steps + j, 0)),
            pl.BlockSpec((tr, _LANE), lambda i, j: (i * steps + j, 0)),
        ],
        out_specs=pl.BlockSpec((1, tr, _LANE), lambda i, j: (i, 0, 0)),
        compiler_params=pltpu.CompilerParams(
            dimension_semantics=("parallel", "arbitrary")),
        cost_estimate=cost,
    )(p2, q2)

    # Final reduction over <= (2, tile_rows, 128) f32 partials is trivial.
    return jnp.sum(partials)


if __name__ == "__main__":
    key = jax.random.PRNGKey(0)
    kp, kn = jax.random.split(key)

    # 1) Small lane-aligned f32 case (batch of scores), no padding / no mask.
    pos = jax.random.normal(kp, (64, 128), dtype=jnp.float32)
    neg = jax.random.normal(kn, (64, 128), dtype=jnp.float32)
    loss = margin_loss(pos, neg)
    jax.block_until_ready(loss)
    ref = jnp.sum(jnp.maximum(pos - neg, 0.0))
    assert jnp.allclose(loss, ref, rtol=1e-4, atol=1e-2), (loss, ref)

    # 2) Ragged bf16 case (native-dtype path + minimal tail padding).
    pos2 = jax.random.normal(kp, (3, 5, 17), dtype=jnp.bfloat16)
    neg2 = jax.random.normal(kn, (3, 5, 17), dtype=jnp.bfloat16)
    loss2 = margin_loss(pos2, neg2)
    jax.block_until_ready(loss2)
    ref2 = jnp.sum(jnp.maximum(pos2.astype(jnp.float32)
                               - neg2.astype(jnp.float32), 0.0))
    assert jnp.allclose(loss2, ref2, rtol=1e-3, atol=1e-2), (loss2, ref2)

    # 3) Ragged f32 case that exercises the in-kernel row mask + 2-way split.
    pos3 = jax.random.normal(kp, (5, 300), dtype=jnp.float32)
    neg3 = jax.random.normal(kn, (5, 300), dtype=jnp.float32)
    loss3 = margin_loss(pos3, neg3)
    jax.block_until_ready(loss3)
    ref3 = jnp.sum(jnp.maximum(pos3 - neg3, 0.0))
    assert jnp.allclose(loss3, ref3, rtol=1e-4, atol=1e-2), (loss3, ref3)

    print("KERNEL_OK")
</pallas_src>

<mosaic_0001>
module attributes {stable_mosaic.version = 11 : i64} {
  func.func @_margin_loss_kernel(%arg0: i32, %arg1: i32, %arg2: memref<64x128xf32, #tpu.memory_space<vmem>>, %arg3: memref<64x128xf32, #tpu.memory_space<vmem>>, %arg4: memref<1x64x128xf32, #tpu.memory_space<vmem>>) attributes {dimension_semantics = [#tpu.dimension_semantics<parallel>, #tpu.dimension_semantics<arbitrary>], iteration_bounds = array<i64: 1, 1>, scalar_prefetch = 0 : i64, scratch_operands = 0 : i64, tpu.core_type = #tpu.core_type<tc>, window_params = [{transform_indices = @transform_0, window_bounds = array<i64: 64, 128>}, {transform_indices = @transform_1, window_bounds = array<i64: 64, 128>}, {transform_indices = @transform_2, window_bounds = array<i64: 1, 64, 128>}]} {
    %c0_i32 = arith.constant 0 : i32
    %0 = arith.cmpi eq, %arg1, %c0_i32 : i32
    %1 = arith.extui %0 : i1 to i32
    %c0_i32_0 = arith.constant 0 : i32
    %2 = arith.cmpi ne, %1, %c0_i32_0 : i32
    scf.if %2 {
      %cst_10 = arith.constant 0.000000e+00 : f32
      %14 = vector.broadcast %cst_10 : f32 to vector<1x64x128xf32>
      %c0_11 = arith.constant 0 : index
      %c0_12 = arith.constant 0 : index
      %c0_13 = arith.constant 0 : index
      %15 = vector.load %arg4[%c0_11, %c0_12, %c0_13] : memref<1x64x128xf32, #tpu.memory_space<vmem>>, vector<1x64x128xf32>
      tpu.vector_store %arg4[%c0_11, %c0_12, %c0_13], %14 {strides = array<i32>} : memref<1x64x128xf32, #tpu.memory_space<vmem>>, vector<1x64x128xf32>,
    } else {
    }
    %c0 = arith.constant 0 : index
    %c0_1 = arith.constant 0 : index
    %3 = vector.load %arg2[%c0, %c0_1] : memref<64x128xf32, #tpu.memory_space<vmem>>, vector<64x128xf32>
    %c0_2 = arith.constant 0 : index
    %c0_3 = arith.constant 0 : index
    %4 = vector.load %arg3[%c0_2, %c0_3] : memref<64x128xf32, #tpu.memory_space<vmem>>, vector<64x128xf32>
    %5 = arith.subf %3, %4 : vector<64x128xf32>
    %cst = arith.constant 0.000000e+00 : f32
    %6 = vector.broadcast %cst : f32 to vector<64x128xf32>
    %7 = arith.maximumf %5, %6 : vector<64x128xf32>
    %c0_4 = arith.constant 0 : index
    %c0_5 = arith.constant 0 : index
    %c0_6 = arith.constant 0 : index
    %8 = vector.load %arg4[%c0_4, %c0_5, %c0_6] : memref<1x64x128xf32, #tpu.memory_space<vmem>>, vector<1x64x128xf32>
    %9 = vector.shape_cast %8 : vector<1x64x128xf32> to vector<64x128xf32>
    %10 = arith.addf %9, %7 : vector<64x128xf32>
    %c0_7 = arith.constant 0 : index
    %c0_8 = arith.constant 0 : index
    %c0_9 = arith.constant 0 : index
    %11 = vector.load %arg4[%c0_7, %c0_8, %c0_9] : memref<1x64x128xf32, #tpu.memory_space<vmem>>, vector<1x64x128xf32>
    %12 = vector.shape_cast %11 : vector<1x64x128xf32> to vector<64x128xf32>
    %13 = vector.shape_cast %10 : vector<64x128xf32> to vector<1x64x128xf32>
    tpu.vector_store %arg4[%c0_7, %c0_8, %c0_9], %13 {strides = array<i32>} : memref<1x64x128xf32, #tpu.memory_space<vmem>>, vector<1x64x128xf32>,
    return
  }
  func.func @transform_0(%arg0: i32, %arg1: i32) -> (i32, i32) {
    %c1_i32 = arith.constant 1 : i32
    %0 = arith.muli %arg0, %c1_i32 : i32
    %1 = arith.addi %0, %arg1 : i32
    %c0_i32 = arith.constant 0 : i32
    %c0_i32_0 = arith.constant 0 : i32
    return %1, %c0_i32 : i32, i32
  }
  func.func @transform_1(%arg0: i32, %arg1: i32) -> (i32, i32) {
    %c1_i32 = arith.constant 1 : i32
    %0 = arith.muli %arg0, %c1_i32 : i32
    %1 = arith.addi %0, %arg1 : i32
    %c0_i32 = arith.constant 0 : i32
    %c0_i32_0 = arith.constant 0 : i32
    return %1, %c0_i32 : i32, i32
  }
  func.func @transform_2(%arg0: i32, %arg1: i32) -> (i32, i32, i32) {
    %c0_i32 = arith.constant 0 : i32
    %c0_i32_0 = arith.constant 0 : i32
    %c0_i32_1 = arith.constant 0 : i32
    return %arg0, %c0_i32, %c0_i32_0 : i32, i32, i32
  }
}

</mosaic_0001>

<bundles_post_ra>
// kernel: tpu_custom_call.1
= control target key start
LH: loop header
LB: loop body
LE: loop exit
PB: predicated region body
PF: predicated region fallthrough
CT: control target
= control target key end

     0   :  { %7 = vsyncpa [#allocation3], 0  ;;  %s266_s0 = inlined_call_operand.hbm [shape: f32[64,128], index: 0, kind: input, shape index: {}]   ;;  %s267_s1 = inlined_call_operand.hbm [shape: f32[64,128], index: 1, kind: input, shape index: {}]   ;;  %s268_s2 = inlined_call_operand.hbm [shape: f32[1,64,128], index: 2, kind: output, shape index: {}]  }
   0x1   :  { %8 = vsyncpa [#allocation6], 0 }
   0x2   :  { %9 = vsyncpa [#allocation4], 0  ;;  %s18_s11 = sshll.u32 %s266_s0, 4  ;;  %s228_s12 = smov [#allocation2]   ;;  %s19_s11 = int_to_ptr.hbm [resolvable:$true] %s18_s11 }
   0x3   :  { %s20_s13 = sshll.u32 %s228_s12, 4  ;;  %s35_s16 = sshll.u32 %s267_s1, 4  ;;  %s21_s13 = int_to_ptr.vmem [resolvable:$true] %s20_s13  ;;  %s36_s16 = int_to_ptr.hbm [resolvable:$true] %s35_s16 }
   0x4   :  { %s229_s17 = smov 128   ;;  %s230_s18 = smov 8  }
   0x5   :  { %26 = dma.hbm_to_vmem [thread:$0]  %s19_s11, 1024, %s21_s13, [#allocation3], %s229_s17, %s229_s17, %s230_s18  }
   0x6   :  { %s231_s19 = smov [#allocation5]  }
   0x7   :  { %s37_s20 = sshll.u32 %s231_s19, 4  ;;  %s38_s20 = int_to_ptr.vmem [resolvable:$true] %s37_s20 }
   0x8   :  { %43 = dma.hbm_to_vmem [thread:$0]  %s36_s16, 1024, %s38_s20, [#allocation6], %s229_s17, %s229_s17, %s230_s18  }
   0x9   :  { %222 = dma.done.wait [#allocation3], 1024  }
   0xa   :  { %223 = vsyncadd [#allocation3], 4294966272 }
   0xb   :  { %224 = dma.done.wait [#allocation6], 1024  }
   0xc   :  { %225 = vsyncadd [#allocation6], 4294966272  ;;  %v68_v0 = vld [vmem:[#allocation2] sm:$0xff]  ;;  %v69_v2 = vld [vmem:[#allocation2 + $0x8] sm:$0xff]  ;;  %s232_s0 = smov [#allocation7]   ;;  %s130_s23 = sshll.u32 %s268_s2, 4  ;;  %s131_s23 = int_to_ptr.hbm [resolvable:$true] %s130_s23 }
   0xd   :  { %v76_v1 = vld [vmem:[#allocation5] sm:$0xff]  ;;  %v77_v4 = vld [vmem:[#allocation5 + $0x8] sm:$0xff]  ;;  %v70_v5 = vld [vmem:[#allocation2 + $0x10] sm:$0xff]  ;;  %s128_s1 = sshll.u32 %s232_s0, 4  ;;  %s129_s1 = int_to_ptr.vmem [resolvable:$true] %s128_s1 }
   0xe   :  { %v84_v3 = vsub.f32 %v68_v0, %v76_v1  ;;  %v78_v6 = vld [vmem:[#allocation5 + $0x10] sm:$0xff]  ;;  %v85_v7 = vsub.f32 %v69_v2, %v77_v4  ;;  %v71_v9 = vld [vmem:[#allocation2 + $0x18] sm:$0xff]  ;;  %v72_v11 = vld [vmem:[#allocation2 + $0x20] sm:$0xff] }
   0xf   :  { %v86_v8 = vsub.f32 %v70_v5, %v78_v6  ;;  %v79_v10 = vld [vmem:[#allocation5 + $0x18] sm:$0xff]  ;;  %v80_v14 = vld [vmem:[#allocation5 + $0x20] sm:$0xff]  ;;  %v73_v15 = vld [vmem:[#allocation2 + $0x28] sm:$0xff] }
  0x10   :  { %v92_v12 = vmax.f32 %v84_v3, 0.0  ;;  %v87_v13 = vsub.f32 %v71_v9, %v79_v10  ;;  %v81_v16 = vld [vmem:[#allocation5 + $0x28] sm:$0xff]  ;;  %v93_v17 = vmax.f32 %v85_v7, 0.0  ;;  %v88_v19 = vsub.f32 %v72_v11, %v80_v14  ;;  %v74_v21 = vld [vmem:[#allocation2 + $0x30] sm:$0xff]  ;;  %v75_v23 = vld [vmem:[#allocation2 + $0x38] sm:$0xff] }
  0x11   :  { %v94_v18 = vmax.f32 %v86_v8, 0.0  ;;  %v89_v20 = vsub.f32 %v73_v15, %v81_v16  ;;  %v82_v22 = vld [vmem:[#allocation5 + $0x30] sm:$0xff]  ;;  %v83_v26 = vld [vmem:[#allocation5 + $0x38] sm:$0xff] }
  0x12   :  { %v95_v24 = vmax.f32 %v87_v13, 0.0  ;;  %v90_v25 = vsub.f32 %v74_v21, %v82_v22  ;;  %v96_v27 = vmax.f32 %v88_v19, 0.0  ;;  %116 = vst [vmem:[#allocation7] sm:$0xff] %v92_v12  ;;  %v91_v30 = vsub.f32 %v75_v23, %v83_v26 }
  0x13   :  { %v97_v28 = vmax.f32 %v89_v20, 0.0  ;;  %117 = vst [vmem:[#allocation7 + $0x8] sm:$0xff] %v93_v17 }
  0x14   :  { %v98_v29 = vmax.f32 %v90_v25, 0.0  ;;  %118 = vst [vmem:[#allocation7 + $0x10] sm:$0xff] %v94_v18  ;;  %v99_v31 = vmax.f32 %v91_v30, 0.0 }
  0x15   :  { %119 = vst [vmem:[#allocation7 + $0x18] sm:$0xff] %v95_v24 }
  0x16   :  { %120 = vst [vmem:[#allocation7 + $0x20] sm:$0xff] %v96_v27 }
  0x17   :  { %121 = vst [vmem:[#allocation7 + $0x28] sm:$0xff] %v97_v28 }
  0x18   :  { %122 = vst [vmem:[#allocation7 + $0x30] sm:$0xff] %v98_v29 }
  0x19   :  { %123 = vst [vmem:[#allocation7 + $0x38] sm:$0xff] %v99_v31 }
  0x1a   :  { %136 = dma.vmem_to_hbm [thread:$0]  %s129_s1, 1024, %s131_s23, [#allocation4], %s229_s17, %s229_s17, %s230_s18  }
  0x1b   :  { %226 = dma.done.wait [#allocation4], 1024  }
  0x1c   :  { %227 = vsyncadd [#allocation4], 4294966272 }
  0x1d   :  { %141 = vsyncpa [#allocation3], 1 }
  0x1e   :  { %142 = vsyncpa [#allocation6], 1 }
  0x1f   :  { %143 = vsyncpa [#allocation4], 1 }

</bundles_post_ra>
